<compile_context>
chip_gen: v7x
topology: tpu7x:2x2x1
jax: 0.10.0
libtpu: 0.0.40
codegen_flags: <defaults>
</compile_context>

<pallas_src>
import functools

import jax
import jax.numpy as jnp
from jax import lax
from jax.experimental import pallas as pl
from jax.experimental.pallas import tpu as pltpu


def _wmse_partial_kernel(o_ref, g_ref, part_ref, *, H, W, ratio, hw, tile_h,
                         ragged):
    i = pl.program_id(0)
    th = o_ref.shape[0]

    diff = o_ref[...].astype(jnp.float32) - g_ref[...].astype(jnp.float32)

    # Global row index of every element in this tile (reused by both the
    # ragged mask and the corner mask); cheap iota, hoisted once.
    row = lax.broadcasted_iota(jnp.int32, (th, W), 0) + i * tile_h

    if ragged:
        # Zero rows past the end of the image so OOB-padded data is inert.
        diff = jnp.where(row < H, diff, jnp.float32(0.0))
    sq = diff * diff

    # Plain (unweighted) tile sum, scaled by ratio.  Lane-dense (8,128)
    # partial block -> one unmasked vst.
    part_ref[...] = jnp.full(part_ref.shape, jnp.float32(ratio) * jnp.sum(sq))

    # Corner correction: only for tiles whose row range intersects the top
    # [0, hw) or bottom [H-hw, H) band.
    touches_edge = (i * tile_h < hw) | ((i + 1) * tile_h > (H - hw))

    @pl.when(touches_edge)
    def _():
        col = lax.broadcasted_iota(jnp.int32, (th, W), 1)
        corner = ((row < hw) | (row >= (H - hw))) & \
                 ((col < hw) | (col >= (W - hw)))
        corr = jnp.sum(jnp.where(corner, sq, jnp.float32(0.0)))
        part_ref[...] += jnp.float32(1.0 - ratio) * corr


def wmse(output, gt, *, ratio=10, half_width=5, tile_h=None):
    assert output.shape == gt.shape and output.ndim == 2
    H, W = output.shape
    itemsize = jnp.dtype(output.dtype).itemsize
    sub = max(8, 32 // itemsize)  # sublane multiple: 8 for f32, 16 for bf16

    if tile_h is None:
        # Target ~4 MiB per input block -> 2 inputs x 2 buffers ~= 16 MiB VMEM.
        target_bytes = 4 * 1024 * 1024
        rows = (target_bytes // max(1, W * itemsize)) // sub * sub
        tile_h = int(max(sub, rows))
    if tile_h >= H:
        tile_h = H  # single tile covering the full height (full-dim block ok)
    else:
        tile_h = max(sub, (tile_h // sub) * sub)
    # TODO(synk): if a single row band (sub rows x W) still exceeds the VMEM
    # budget (extremely wide W), add a second grid axis over W.

    num_tiles = int(pl.cdiv(H, tile_h))
    ragged = (H % tile_h) != 0

    hw = int(half_width)
    r = float(ratio)
    # sum(weight) analytically: the corner union is (row band) x (col band).
    n_corner = min(2 * hw, H) * min(2 * hw, W)
    w_sum = r * (H * W - n_corner) + float(n_corner)

    kernel = functools.partial(
        _wmse_partial_kernel,
        H=H, W=W, ratio=r, hw=hw, tile_h=tile_h, ragged=ragged)

    partials = pl.pallas_call(
        kernel,
        out_shape=jax.ShapeDtypeStruct((num_tiles, 8, 128), jnp.float32),
        grid_spec=pltpu.PrefetchScalarGridSpec(
            num_scalar_prefetch=0,
            grid=(num_tiles,),
            in_specs=[
                pl.BlockSpec((tile_h, W), lambda i: (i, 0)),
                pl.BlockSpec((tile_h, W), lambda i: (i, 0)),
            ],
            out_specs=pl.BlockSpec((1, 8, 128), lambda i: (i, 0, 0)),
        ),
        compiler_params=pltpu.CompilerParams(
            dimension_semantics=("parallel",),
            vmem_limit_bytes=32 * 1024 * 1024,
        ),
    )(output, gt)

    # Tiny final reduce over per-tile partials + analytic normalization.
    return jnp.sum(partials[:, 0, 0]) / jnp.float32(w_sum)


def _wmse_ref(output, gt, ratio=10, half_width=5):
    H, W = output.shape
    hw = half_width
    weight = jnp.full((H, W), float(ratio), jnp.float32)
    weight = weight.at[:hw, :hw].set(1.0)
    weight = weight.at[:hw, W - hw:].set(1.0)
    weight = weight.at[H - hw:, :hw].set(1.0)
    weight = weight.at[H - hw:, W - hw:].set(1.0)
    weight = weight / jnp.sum(weight)
    return jnp.sum(jnp.square(output.astype(jnp.float32) -
                              gt.astype(jnp.float32)) * weight)


if __name__ == "__main__":
    key = jax.random.PRNGKey(0)

    # Case 1: single-tile path (original demo size).
    k1, k2 = jax.random.split(key)
    H, W = 16, 16
    out1 = jax.random.normal(k1, (H, W), jnp.float32)
    gt1 = jax.random.normal(k2, (H, W), jnp.float32)
    loss1 = jax.block_until_ready(wmse(out1, gt1, ratio=10, half_width=5))
    ref1 = _wmse_ref(out1, gt1, ratio=10, half_width=5)
    assert jnp.allclose(loss1, ref1, rtol=1e-5, atol=1e-6), (loss1, ref1)

    # Case 2: multi-tile + ragged tail + corner correction in edge tiles.
    k3, k4 = jax.random.split(k2)
    H2, W2 = 24, 16
    out2 = jax.random.normal(k3, (H2, W2), jnp.float32)
    gt2 = jax.random.normal(k4, (H2, W2), jnp.float32)
    loss2 = jax.block_until_ready(
        wmse(out2, gt2, ratio=10, half_width=5, tile_h=16))
    ref2 = _wmse_ref(out2, gt2, ratio=10, half_width=5)
    assert jnp.allclose(loss2, ref2, rtol=1e-5, atol=1e-6), (loss2, ref2)

    # Case 3: corners overlap the whole image (H, W < 2*hw) -> all-ones weight.
    k5, k6 = jax.random.split(k4)
    H3, W3 = 8, 8
    out3 = jax.random.normal(k5, (H3, W3), jnp.float32)
    gt3 = jax.random.normal(k6, (H3, W3), jnp.float32)
    loss3 = jax.block_until_ready(wmse(out3, gt3, ratio=10, half_width=5))
    ref3 = _wmse_ref(out3, gt3, ratio=10, half_width=5)
    assert jnp.allclose(loss3, ref3, rtol=1e-5, atol=1e-6), (loss3, ref3)

    print("KERNEL_OK")
</pallas_src>

<mosaic_0001>
module attributes {stable_mosaic.version = 11 : i64} {
  func.func @_wmse_partial_kernel(%arg0: i32, %arg1: memref<16x16xf32, #tpu.memory_space<vmem>>, %arg2: memref<16x16xf32, #tpu.memory_space<vmem>>, %arg3: memref<1x8x128xf32, #tpu.memory_space<vmem>>) attributes {dimension_semantics = [#tpu.dimension_semantics<parallel>], iteration_bounds = array<i64: 1>, scalar_prefetch = 0 : i64, scratch_operands = 0 : i64, tpu.core_type = #tpu.core_type<tc>, window_params = [{transform_indices = @transform_0, window_bounds = array<i64: 16, 16>}, {transform_indices = @transform_1, window_bounds = array<i64: 16, 16>}, {transform_indices = @transform_2, window_bounds = array<i64: 1, 8, 128>}]} {
    %c0 = arith.constant 0 : index
    %c0_0 = arith.constant 0 : index
    %0 = vector.load %arg1[%c0, %c0_0] : memref<16x16xf32, #tpu.memory_space<vmem>>, vector<16x16xf32>
    %c0_1 = arith.constant 0 : index
    %c0_2 = arith.constant 0 : index
    %1 = vector.load %arg2[%c0_1, %c0_2] : memref<16x16xf32, #tpu.memory_space<vmem>>, vector<16x16xf32>
    %2 = arith.subf %0, %1 : vector<16x16xf32>
    %3 = tpu.iota {dimensions = array<i32: 0>} : vector<16x16xi32>
    %c16_i32 = arith.constant 16 : i32
    %4 = arith.muli %arg0, %c16_i32 : i32
    %5 = vector.broadcast %4 : i32 to vector<16x16xi32>
    %6 = arith.addi %3, %5 : vector<16x16xi32>
    %7 = arith.mulf %2, %2 : vector<16x16xf32>
    %8 = vector.shape_cast %7 : vector<16x16xf32> to vector<1x16x16xf32>
    %cst = arith.constant dense<0.000000e+00> : vector<1xf32>
    %9 = vector.multi_reduction <add>, %8, %cst [1, 2] : vector<1x16x16xf32> to vector<1xf32>
    %10 = vector.shape_cast %9 : vector<1xf32> to vector<1x1x1xf32>
    %11 = vector.extract %10[0, 0, 0] : f32 from vector<1x1x1xf32>
    %cst_3 = arith.constant 1.000000e+01 : f32
    %12 = arith.mulf %cst_3, %11 : f32
    %13 = vector.broadcast %12 : f32 to vector<1x8x128xf32>
    %c0_4 = arith.constant 0 : index
    %c0_5 = arith.constant 0 : index
    %c0_6 = arith.constant 0 : index
    %14 = vector.load %arg3[%c0_4, %c0_5, %c0_6] : memref<1x8x128xf32, #tpu.memory_space<vmem>>, vector<1x8x128xf32>
    tpu.vector_store %arg3[%c0_4, %c0_5, %c0_6], %13 {strides = array<i32>} : memref<1x8x128xf32, #tpu.memory_space<vmem>>, vector<1x8x128xf32>,
    %c16_i32_7 = arith.constant 16 : i32
    %15 = arith.muli %arg0, %c16_i32_7 : i32
    %c5_i32 = arith.constant 5 : i32
    %16 = arith.cmpi slt, %15, %c5_i32 : i32
    %c1_i32 = arith.constant 1 : i32
    %17 = arith.addi %arg0, %c1_i32 : i32
    %c16_i32_8 = arith.constant 16 : i32
    %18 = arith.muli %17, %c16_i32_8 : i32
    %c11_i32 = arith.constant 11 : i32
    %19 = arith.cmpi sgt, %18, %c11_i32 : i32
    %20 = arith.ori %16, %19 : i1
    %21 = arith.extui %20 : i1 to i32
    %c0_i32 = arith.constant 0 : i32
    %22 = arith.cmpi ne, %21, %c0_i32 : i32
    scf.if %22 {
      %23 = tpu.iota {dimensions = array<i32: 1>} : vector<16x16xi32>
      %c5_i32_9 = arith.constant 5 : i32
      %24 = vector.broadcast %c5_i32_9 : i32 to vector<16x16xi32>
      %25 = arith.cmpi slt, %6, %24 : vector<16x16xi32>
      %c11_i32_10 = arith.constant 11 : i32
      %26 = vector.broadcast %c11_i32_10 : i32 to vector<16x16xi32>
      %27 = arith.cmpi sge, %6, %26 : vector<16x16xi32>
      %28 = arith.ori %25, %27 : vector<16x16xi1>
      %c5_i32_11 = arith.constant 5 : i32
      %29 = vector.broadcast %c5_i32_11 : i32 to vector<16x16xi32>
      %30 = arith.cmpi slt, %23, %29 : vector<16x16xi32>
      %c11_i32_12 = arith.constant 11 : i32
      %31 = vector.broadcast %c11_i32_12 : i32 to vector<16x16xi32>
      %32 = arith.cmpi sge, %23, %31 : vector<16x16xi32>
      %33 = arith.ori %30, %32 : vector<16x16xi1>
      %34 = arith.andi %28, %33 : vector<16x16xi1>
      %cst_13 = arith.constant 0.000000e+00 : f32
      %35 = vector.broadcast %cst_13 : f32 to vector<16x16xf32>
      %36 = arith.select %34, %7, %35 : vector<16x16xi1>, vector<16x16xf32>
      %37 = vector.shape_cast %36 : vector<16x16xf32> to vector<1x16x16xf32>
      %cst_14 = arith.constant dense<0.000000e+00> : vector<1xf32>
      %38 = vector.multi_reduction <add>, %37, %cst_14 [1, 2] : vector<1x16x16xf32> to vector<1xf32>
      %39 = vector.shape_cast %38 : vector<1xf32> to vector<1x1x1xf32>
      %40 = vector.extract %39[0, 0, 0] : f32 from vector<1x1x1xf32>
      %c0_15 = arith.constant 0 : index
      %c0_16 = arith.constant 0 : index
      %c0_17 = arith.constant 0 : index
      %41 = vector.load %arg3[%c0_15, %c0_16, %c0_17] : memref<1x8x128xf32, #tpu.memory_space<vmem>>, vector<1x8x128xf32>
      %cst_18 = arith.constant -9.000000e+00 : f32
      %42 = arith.mulf %cst_18, %40 : f32
      %43 = vector.broadcast %42 : f32 to vector<1x8x128xf32>
      %44 = arith.addf %41, %43 : vector<1x8x128xf32>
      %c0_19 = arith.constant 0 : index
      %c0_20 = arith.constant 0 : index
      %c0_21 = arith.constant 0 : index
      %45 = vector.load %arg3[%c0_19, %c0_20, %c0_21] : memref<1x8x128xf32, #tpu.memory_space<vmem>>, vector<1x8x128xf32>
      tpu.vector_store %arg3[%c0_19, %c0_20, %c0_21], %44 {strides = array<i32>} : memref<1x8x128xf32, #tpu.memory_space<vmem>>, vector<1x8x128xf32>,
    } else {
    }
    return
  }
  func.func @transform_0(%arg0: i32) -> (i32, i32) {
    %c0_i32 = arith.constant 0 : i32
    %c0_i32_0 = arith.constant 0 : i32
    return %arg0, %c0_i32 : i32, i32
  }
  func.func @transform_1(%arg0: i32) -> (i32, i32) {
    %c0_i32 = arith.constant 0 : i32
    %c0_i32_0 = arith.constant 0 : i32
    return %arg0, %c0_i32 : i32, i32
  }
  func.func @transform_2(%arg0: i32) -> (i32, i32, i32) {
    %c0_i32 = arith.constant 0 : i32
    %c0_i32_0 = arith.constant 0 : i32
    %c0_i32_1 = arith.constant 0 : i32
    return %arg0, %c0_i32, %c0_i32_0 : i32, i32, i32
  }
}

</mosaic_0001>

<bundles_post_ra>
// kernel: tpu_custom_call.1
= control target key start
LH: loop header
LB: loop body
LE: loop exit
PB: predicated region body
PF: predicated region fallthrough
CT: control target
= control target key end

     0   :  { %7 = vsyncpa [#allocation3], 0  ;;  %s264_s0 = inlined_call_operand.hbm [shape: f32[16,16], index: 0, kind: input, shape index: {}]   ;;  %s265_s1 = inlined_call_operand.hbm [shape: f32[16,16], index: 1, kind: input, shape index: {}]   ;;  %s266_s2 = inlined_call_operand.hbm [shape: f32[1,8,128], index: 2, kind: output, shape index: {}]  }
   0x1   :  { %8 = vsyncpa [#allocation6], 0 }
   0x2   :  { %9 = vsyncpa [#allocation4], 0  ;;  %s208_s9 = smov [#allocation2]   ;;  %s136_s13 = scalar_lea.hbm %s264_s0, 256 }
   0x3   :  { %s15_s10 = sshll.u32 %s208_s9, 4  ;;  %p137_p0 = scmp.ne.s32.totalorder %s264_s0, %s136_s13  ;;  %s16_s10 = int_to_ptr.vmem [resolvable:$true] %s15_s10 }
   0x4   :  { %p140_p1 = scmp.lt.u32.totalorder %s136_s13, %s264_s0 }
   0x6   :  { %p142_p2 = pnand %p140_p1, %p137_p0 }
   0x8   :  { %145 = shalt.err (!%p142_p2)
}
   0x9   :  { %s146_s18 = scalar_lea.vmem %s16_s10, 256  ;;  %p151_p4 = scmp.lt.s32.totalorder %s16_s10, %s16_s10 }
   0xa   :  { %p147_p3 = scmp.ne.s32.totalorder %s16_s10, %s146_s18  ;;  %p152_p5 = scmp.lt.s32.totalorder %s146_s18, %s146_s18 }
   0xc   :  { %p153_p6 = por %p152_p5, %p151_p4 }
   0xe   :  { %p154_p7 = pnand %p153_p6, %p147_p3 }
  0x10   :  { %157 = shalt.err (!%p154_p7)
}
  0x11   :  { %s209_s19 = smov 128   ;;  %s210_s20 = smov 8  }
  0x12   :  { %21 = dma.hbm_to_vmem [thread:$0]  %s264_s0, 256, %s16_s10, [#allocation3], %s209_s19, %s209_s19, %s210_s20  }
  0x13   :  { %s211_s23 = smov [#allocation5]   ;;  %s158_s27 = scalar_lea.hbm %s265_s1, 256 }
  0x14   :  { %s27_s24 = sshll.u32 %s211_s23, 4  ;;  %p159_p8 = scmp.ne.s32.totalorder %s265_s1, %s158_s27  ;;  %s28_s24 = int_to_ptr.vmem [resolvable:$true] %s27_s24 }
  0x15   :  { %p162_p9 = scmp.lt.u32.totalorder %s158_s27, %s265_s1 }
  0x17   :  { %p164_p10 = pnand %p162_p9, %p159_p8 }
  0x19   :  { %167 = shalt.err (!%p164_p10)
}
  0x1a   :  { %s168_s4 = scalar_lea.vmem %s28_s24, 256  ;;  %p173_p12 = scmp.lt.s32.totalorder %s28_s24, %s28_s24 }
  0x1b   :  { %p169_p11 = scmp.ne.s32.totalorder %s28_s24, %s168_s4  ;;  %p174_p13 = scmp.lt.s32.totalorder %s168_s4, %s168_s4 }
  0x1d   :  { %p175_p0 = por %p174_p13, %p173_p12 }
  0x1f   :  { %p176_p1 = pnand %p175_p0, %p169_p11 }
  0x21   :  { %179 = shalt.err (!%p176_p1)
}
  0x22   :  { %33 = dma.hbm_to_vmem [thread:$0]  %s265_s1, 256, %s28_s24, [#allocation6], %s209_s19, %s209_s19, %s210_s20  }
  0x23   :  { %202 = dma.done.wait [#allocation3], 256  }
  0x24   :  { %203 = vsyncadd [#allocation3], 4294967040 }
  0x25   :  { %204 = dma.done.wait [#allocation6], 256  }
  0x26   :  { %205 = vsyncadd [#allocation6], 4294967040  ;;  %v46_v0 = vlaneseq  ;;  %v40_v4 = vld [vmem:[#allocation2] sm:$0xff]  ;;  %v41_v5 = vld [vmem:[#allocation2 + $0x8] sm:$0xff]  ;;  %vm55_vm5 = vcmask 130048   ;;  %s212_s9 = smov [#allocation7]  }
  0x27   :  { %v42_v6 = vld [vmem:[#allocation5] sm:$0xff]  ;;  %v43_v7 = vld [vmem:[#allocation5 + $0x8] sm:$0xff]  ;;  %s117_s10 = sshll.u32 %s212_s9, 4  ;;  %s118_s10 = int_to_ptr.vmem [resolvable:$true] %s117_s10 }
  0x28   :  { %v47_v1 = vshrl.u32 %v46_v0, 7  ;;  %v80_v2 = vand.u32 127, %v46_v0  ;;  %v44_v8 = vsub.f32 %v40_v4, %v42_v6  ;;  %v45_v9 = vsub.f32 %v41_v5, %v43_v7  ;;  %s180_s11 = scalar_lea.vmem %s118_s10, 128  ;;  %p185_p3 = scmp.lt.s32.totalorder %s118_s10, %s118_s10 }
  0x29   :  { %p181_p2 = scmp.ne.s32.totalorder %s118_s10, %s180_s11  ;;  %p186_p4 = scmp.lt.s32.totalorder %s180_s11, %s180_s11 }
  0x2a   :  { %v48_v3 = vadd.s32 8, %v47_v1  ;;  %vm87_vm0 = vcmp.lt.s32.totalorder %v80_v2, 5  ;;  %vm88_vm1 = vcmp.ge.s32.totalorder %v80_v2, 11  ;;  %vm81_vm2 = vcmp.lt.s32.totalorder %v47_v1, 5 }
  0x2b   :  { %vm89_vm3 = vmor %vm87_vm0, %vm88_vm1  ;;  %v53_v10 = vmul.f32 %v44_v8, %v44_v8  ;;  %v54_v11 = vmul.f32 %v45_v9, %v45_v9  ;;  %p187_p5 = por %p186_p4, %p185_p3 }
  0x2c   :  { %vm84_vm4 = vcmp.ge.s32.totalorder %v48_v3, 11  ;;  %vm90_vm6 = vmand %vm81_vm2, %vm89_vm3 }
  0x2d   :  { %vm91_vm7 = vmand %vm84_vm4, %vm89_vm3  ;;  %v56_v12 = vsel %vm55_vm5, %v53_v10, 0.0  ;;  %v92_v13 = vsel %vm90_vm6, %v53_v10, 0.0  ;;  %v57_v14 = vsel %vm55_vm5, %v54_v11, 0.0  ;;  %p188_p6 = pnand %p187_p5, %p181_p2 }
  0x2e   :  { %v93_v15 = vsel %vm91_vm7, %v54_v11, 0.0  ;;  %v94_v16 = vsel %vm55_vm5, %v92_v13, 0.0  ;;  %v58_v17 = vadd.f32 %v57_v14, %v56_v12 }
  0x2f   :  { %v95_v18 = vsel %vm55_vm5, %v93_v15, 0.0 }
  0x30   :  { %59 = vadd.xlane.f32.xlu0 %v58_v17  ;;  %v96_v19 = vadd.f32 %v95_v18, %v94_v16 }
  0x34   :  { %97 = vadd.xlane.f32.xlu0 %v96_v19 }
  0xbd   :  { %v60_v20 = vpop.xlane.xlu0 %59 }
  0xbe   :  { %v61_v21 = vrot.slane %v60_v20, 4 }
  0xc0   :  { %v62_v22 = vadd.f32 %v61_v21, %v60_v20 }
  0xc1   :  { %v98_v23 = vpop.xlane.xlu0 %97 }
  0xc2   :  { %v63_v24 = vrot.slane %v62_v22, 2  ;;  %v99_v25 = vrot.slane %v98_v23, 4 }
  0xc4   :  { %v100_v26 = vadd.f32 %v99_v25, %v98_v23  ;;  %v64_v27 = vadd.f32 %v63_v24, %v62_v22 }
  0xc6   :  { %v101_v28 = vrot.slane %v100_v26, 2  ;;  %v65_v29 = vrot.slane %v64_v27, 1 }
  0xc8   :  { %v102_v30 = vadd.f32 %v101_v28, %v100_v26  ;;  %v66_v31 = vadd.f32 %v65_v29, %v64_v27 }
  0xca   :  { %127 = vpush %v66_v31  ;;  %v103_v32 = vrot.slane %v102_v30, 1 }
  0xcc   :  { %v104_v33 = vadd.f32 %v103_v32, %v102_v30 }
  0xce   :  { %129 = vpush %v104_v33 }
  0xfb   :  { %s128_s1 = spop %127 }
  0xfc   :  { %s68_s6 = smul.f32 10.0, %s128_s1 }
  0xfe   :  { %v69_v34 = vstv %s68_s6 }
  0xff   :  { %s130_s7 = spop %129 }
 0x100   :  { %s107_s8 = smul.f32 -9.0, %s130_s7 }
 0x102   :  { %v108_v35 = vstv %s107_s8 }
 0x103   :  { %v109_v36 = vadd.f32 %v108_v35, %v69_v34 }
 0x105   :  { %110 = vst [vmem:[#allocation7] sm:$0xff] %v109_v36 }
 0x106   :  { %191 = shalt.err (!%p188_p6)
}
 0x107   :  { %s192_s14 = scalar_lea.hbm %s266_s2, 128 }
 0x108   :  { %p193_p7 = scmp.ne.s32.totalorder %s266_s2, %s192_s14  ;;  %p196_p8 = scmp.lt.u32.totalorder %s192_s14, %s266_s2 }
 0x10a   :  { %p198_p9 = pnand %p196_p8, %p193_p7 }
 0x10c   :  { %201 = shalt.err (!%p198_p9)
}
 0x10d   :  { %120 = dma.vmem_to_hbm [thread:$0]  %s118_s10, 128, %s266_s2, [#allocation4]  }
 0x10e   :  { %206 = dma.done.wait [#allocation4], 128  }
 0x10f   :  { %207 = vsyncadd [#allocation4], 4294967168 }
 0x110   :  { %124 = vsyncpa [#allocation3], 1 }
 0x111   :  { %125 = vsyncpa [#allocation6], 1 }
 0x112   :  { %126 = vsyncpa [#allocation4], 1 }

</bundles_post_ra>
